<compile_context>
chip_gen: v6e
topology: v6e:2x2x1
jax: 0.10.0
libtpu: 0.0.40
codegen_flags: <defaults>
</compile_context>

<pallas_src>
import functools

import jax
import jax.numpy as jnp
from jax.experimental import pallas as pl
from jax.experimental.pallas import tpu as pltpu


LANE = 128            # feature dims padded to lane multiples
MAX_TILE = 512        # row / contraction tile for the tiled path (big graphs)


def _round_up(x, m):
    return (x + m - 1) // m * m


def _pad2d(x, rows, cols):
    r, c = x.shape
    return jnp.pad(x, ((0, rows - r), (0, cols - c)))


def _plan_padding(num_nodes, max_tile=MAX_TILE):
    """Choose padded node count n_p and a tile that exactly divides it."""
    n_128 = _round_up(max(num_nodes, 1), 128)
    tile = n_128 if n_128 <= max_tile else max_tile
    n_p = _round_up(n_128, tile)
    return n_p, tile


# ---------------------------------------------------------------------------
# Fused single-kernel path (whole problem resident in VMEM)
# ---------------------------------------------------------------------------
def _fused_gcn_kernel(a_ref, x_ref, w1_ref, b1_ref, w2_ref, b2_ref, o_ref):
    a = a_ref[...]                                           # bf16 [Np, Np]
    xw1 = jnp.dot(x_ref[...], w1_ref[...],
                  preferred_element_type=jnp.float32).astype(jnp.bfloat16)
    h = jnp.dot(a, xw1, preferred_element_type=jnp.float32) + b1_ref[...]
    h = jnp.maximum(h, 0.0).astype(jnp.bfloat16)
    # dropout(p=0.5, training=False) -> identity (inference mode)
    xw2 = jnp.dot(h, w2_ref[...],
                  preferred_element_type=jnp.float32).astype(jnp.bfloat16)
    out = jnp.dot(a, xw2, preferred_element_type=jnp.float32) + b2_ref[...]
    o_ref[...] = out.astype(o_ref.dtype)


def gcn_fused(a_p, x_p, w1_p, b1_p, w2_p, b2_p):
    n_p = a_p.shape[0]
    f_c_p = w2_p.shape[1]
    return pl.pallas_call(
        _fused_gcn_kernel,
        out_shape=jax.ShapeDtypeStruct((n_p, f_c_p), jnp.float32),
        grid_spec=pltpu.PrefetchScalarGridSpec(
            num_scalar_prefetch=0,
            grid=(1,),
            in_specs=[
                pl.BlockSpec(a_p.shape, lambda i: (0, 0)),
                pl.BlockSpec(x_p.shape, lambda i: (0, 0)),
                pl.BlockSpec(w1_p.shape, lambda i: (0, 0)),
                pl.BlockSpec(b1_p.shape, lambda i: (0, 0)),
                pl.BlockSpec(w2_p.shape, lambda i: (0, 0)),
                pl.BlockSpec(b2_p.shape, lambda i: (0, 0)),
            ],
            out_specs=pl.BlockSpec((n_p, f_c_p), lambda i: (0, 0)),
        ),
    )(a_p, x_p, w1_p, b1_p, w2_p, b2_p)


def fused_fits_vmem(n_p, f_in_p, f_h_p, f_c_p, budget_bytes=16 * 2**20):
    """Rough VMEM estimate; 16 MiB keeps us under every generation's default."""
    a_bytes = 2 * n_p * n_p
    x_bytes = 2 * n_p * f_in_p
    w_bytes = 2 * (f_in_p * f_h_p + f_h_p * f_c_p)
    tmp_bytes = 6 * n_p * max(f_h_p, f_c_p) * 4   # generous f32 temporaries
    return (a_bytes + x_bytes + w_bytes + tmp_bytes) * 1.25 <= budget_bytes


# ---------------------------------------------------------------------------
# Tiled path, kernel 1: feature transform  XW = X @ W  (row-tiled, bf16 out)
# ---------------------------------------------------------------------------
def _xw_kernel(x_ref, w_ref, o_ref):
    o_ref[...] = jnp.dot(
        x_ref[...], w_ref[...], preferred_element_type=jnp.float32
    ).astype(o_ref.dtype)


def feature_transform(x_p, w_p, *, tile_m, out_dtype=jnp.bfloat16):
    """x_p: [Np, Fin_p] bf16, w_p: [Fin_p, Fp] bf16."""
    n_p, f_in = x_p.shape
    f_p = w_p.shape[1]
    assert n_p % tile_m == 0
    return pl.pallas_call(
        _xw_kernel,
        out_shape=jax.ShapeDtypeStruct((n_p, f_p), out_dtype),
        grid_spec=pltpu.PrefetchScalarGridSpec(
            num_scalar_prefetch=0,
            grid=(n_p // tile_m,),
            in_specs=[
                pl.BlockSpec((tile_m, f_in), lambda i: (i, 0)),
                pl.BlockSpec((f_in, f_p), lambda i: (0, 0)),
            ],
            out_specs=pl.BlockSpec((tile_m, f_p), lambda i: (i, 0)),
        ),
        compiler_params=pltpu.CompilerParams(
            dimension_semantics=("parallel",)),
    )(x_p, w_p)


# ---------------------------------------------------------------------------
# Tiled path, kernel 2: aggregation  out = A_hat @ XW + b  [+ ReLU]
# ---------------------------------------------------------------------------
def _aggregate_kernel(a_ref, xw_ref, b_ref, o_ref, acc_ref, *,
                      apply_relu, tile_k, xw_resident):
    k = pl.program_id(1)

    @pl.when(k == 0)
    def _():
        acc_ref[...] = jnp.zeros_like(acc_ref)

    if xw_resident:
        start = pl.multiple_of(k * tile_k, tile_k)
        xw = xw_ref[pl.ds(start, tile_k), :]
    else:
        xw = xw_ref[...]
    acc_ref[...] += jnp.dot(a_ref[...], xw, preferred_element_type=jnp.float32)

    @pl.when(k == pl.num_programs(1) - 1)
    def _():
        out = acc_ref[...] + b_ref[...]
        if apply_relu:
            out = jnp.maximum(out, 0.0)
        o_ref[...] = out.astype(o_ref.dtype)


def aggregate(a_p, xw_p, b_p, *, apply_relu, tile_m, tile_k,
              out_dtype=jnp.float32):
    """a_p: [Np, Np] bf16, xw_p: [Np, Fp] bf16, b_p: [1, Fp] f32."""
    n_p = a_p.shape[0]
    f_p = xw_p.shape[1]
    assert n_p % tile_m == 0 and n_p % tile_k == 0

    # Keep XW VMEM-resident (fetched from HBM once) whenever it is small;
    # otherwise fall back to a k-tiled window.
    xw_resident = n_p * f_p * xw_p.dtype.itemsize <= 8 * 2**20
    if xw_resident:
        xw_spec = pl.BlockSpec((n_p, f_p), lambda i, k: (0, 0))
    else:
        xw_spec = pl.BlockSpec((tile_k, f_p), lambda i, k: (k, 0))

    kernel = functools.partial(_aggregate_kernel, apply_relu=apply_relu,
                               tile_k=tile_k, xw_resident=xw_resident)
    return pl.pallas_call(
        kernel,
        out_shape=jax.ShapeDtypeStruct((n_p, f_p), out_dtype),
        grid_spec=pltpu.PrefetchScalarGridSpec(
            num_scalar_prefetch=0,
            grid=(n_p // tile_m, n_p // tile_k),   # reduction axis last
            in_specs=[
                pl.BlockSpec((tile_m, tile_k), lambda i, k: (i, k)),
                xw_spec,
                pl.BlockSpec((1, f_p), lambda i, k: (0, 0)),
            ],
            out_specs=pl.BlockSpec((tile_m, f_p), lambda i, k: (i, 0)),
            scratch_shapes=[pltpu.VMEM((tile_m, f_p), jnp.float32)],
        ),
        compiler_params=pltpu.CompilerParams(
            dimension_semantics=("parallel", "arbitrary")),
    )(a_p, xw_p, b_p)


# ---------------------------------------------------------------------------
# Normalized adjacency  A_hat = D^-1/2 (A + I) D^-1/2  (built & cast ONCE)
# ---------------------------------------------------------------------------
def build_normalized_adjacency(edge_index, num_nodes):
    src, dst = edge_index[0], edge_index[1]
    a = jnp.zeros((num_nodes, num_nodes), jnp.float32)
    a = a.at[dst, src].set(1.0)                     # message src -> dst
    eye = jnp.eye(num_nodes, dtype=bool)
    a = jnp.where(eye, 1.0, a)                      # add self-loops where missing
    deg = jnp.sum(a, axis=1)
    d_inv_sqrt = jnp.where(deg > 0, 1.0 / jnp.sqrt(deg), 0.0)
    return a * d_inv_sqrt[:, None] * d_inv_sqrt[None, :]


def prepare_adjacency(edge_index, num_nodes, n_p):
    """Build A_hat, pad to n_p, cast to bf16 — hoisted / cached, done once."""
    a = build_normalized_adjacency(edge_index, num_nodes)
    return _pad2d(a, n_p, n_p).astype(jnp.bfloat16)


# ---------------------------------------------------------------------------
# GCN parameters / padding (done once, outside the jitted forward)
# ---------------------------------------------------------------------------
def init_gcn_params(key, num_features, hidden_channels, num_classes):
    k1, k2 = jax.random.split(key)

    def glorot(k, fan_in, fan_out):
        limit = jnp.sqrt(6.0 / (fan_in + fan_out))
        return jax.random.uniform(
            k, (fan_in, fan_out), jnp.float32, minval=-limit, maxval=limit)

    return {
        "w1": glorot(k1, num_features, hidden_channels),
        "b1": jnp.zeros((hidden_channels,), jnp.float32),
        "w2": glorot(k2, hidden_channels, num_classes),
        "b2": jnp.zeros((num_classes,), jnp.float32),
    }


def prepare_params(params):
    """Pad feature dims to 128 lanes, cast weights to bf16 (done once)."""
    f_in, f_h = params["w1"].shape
    _, f_c = params["w2"].shape
    f_in_p = _round_up(f_in, LANE)
    f_h_p = _round_up(f_h, LANE)
    f_c_p = _round_up(f_c, LANE)
    return {
        "w1": _pad2d(params["w1"], f_in_p, f_h_p).astype(jnp.bfloat16),
        "b1": _pad2d(params["b1"].reshape(1, -1), 1, f_h_p),
        "w2": _pad2d(params["w2"], f_h_p, f_c_p).astype(jnp.bfloat16),
        "b2": _pad2d(params["b2"].reshape(1, -1), 1, f_c_p),
    }


def prepare_features(x, n_p):
    """Pad X to [n_p, round_up(F, 128)] and cast to bf16 (done once)."""
    f_in_p = _round_up(x.shape[1], LANE)
    return _pad2d(x, n_p, f_in_p).astype(jnp.bfloat16)


# ---------------------------------------------------------------------------
# Forward (inference mode: dropout is identity)
# ---------------------------------------------------------------------------
@functools.partial(jax.jit,
                   static_argnames=("num_nodes", "num_classes", "fused", "tile"))
def gcn_forward(p_params, x_p, a_hat_p, num_nodes, num_classes, fused, tile):
    if fused:
        out_p = gcn_fused(a_hat_p, x_p, p_params["w1"], p_params["b1"],
                          p_params["w2"], p_params["b2"])
    else:
        # conv1: relu(A_hat @ (X W1) + b1); H kept bf16 for the next MXU matmul
        xw1 = feature_transform(x_p, p_params["w1"], tile_m=tile)
        h = aggregate(a_hat_p, xw1, p_params["b1"], apply_relu=True,
                      tile_m=tile, tile_k=tile, out_dtype=jnp.bfloat16)
        # dropout(p=0.5, training=False) -> identity
        # conv2: A_hat @ (H W2) + b2
        xw2 = feature_transform(h, p_params["w2"], tile_m=tile)
        out_p = aggregate(a_hat_p, xw2, p_params["b2"], apply_relu=False,
                          tile_m=tile, tile_k=tile, out_dtype=jnp.float32)
    return out_p[:num_nodes, :num_classes]


# ---------------------------------------------------------------------------
# Pure-JAX reference with matched bf16 roundings
# ---------------------------------------------------------------------------
def reference_forward(x, params, edge_index, num_nodes):
    a = build_normalized_adjacency(edge_index, num_nodes).astype(jnp.bfloat16)
    xb = x.astype(jnp.bfloat16)
    w1 = params["w1"].astype(jnp.bfloat16)
    w2 = params["w2"].astype(jnp.bfloat16)
    xw1 = jnp.dot(xb, w1, preferred_element_type=jnp.float32).astype(jnp.bfloat16)
    h = jnp.maximum(
        jnp.dot(a, xw1, preferred_element_type=jnp.float32) + params["b1"], 0.0
    ).astype(jnp.bfloat16)
    xw2 = jnp.dot(h, w2, preferred_element_type=jnp.float32).astype(jnp.bfloat16)
    return jnp.dot(a, xw2, preferred_element_type=jnp.float32) + params["b2"]


# ---------------------------------------------------------------------------
if __name__ == "__main__":
    key = jax.random.PRNGKey(0)
    k_x, k_e, k_p = jax.random.split(key, 3)

    # Small synthetic "Cora-like" graph
    num_nodes = 64
    num_features = 16
    hidden_channels = 32
    num_classes = 8
    num_edges = 256

    # node features (row-normalized, mimicking NormalizeFeatures transform)
    x = jax.random.uniform(k_x, (num_nodes, num_features), jnp.float32)
    x = x / jnp.clip(jnp.sum(x, axis=1, keepdims=True), 1e-12)

    # random directed edges [2, E]
    edge_index = jax.random.randint(k_e, (2, num_edges), 0, num_nodes, jnp.int32)

    params = init_gcn_params(k_p, num_features, hidden_channels, num_classes)

    # One-time host-side preprocessing (hoisted out of the forward path)
    n_p, tile = _plan_padding(num_nodes)          # 64 -> 128 (not 256)
    a_hat_p = prepare_adjacency(edge_index, num_nodes, n_p)
    p_params = prepare_params(params)
    x_p = prepare_features(x, n_p)

    f_in_p = x_p.shape[1]
    f_h_p = p_params["w1"].shape[1]
    f_c_p = p_params["w2"].shape[1]
    fused = fused_fits_vmem(n_p, f_in_p, f_h_p, f_c_p)   # True at this size

    # Fused single-kernel path (the one that matters at this scale)
    out = gcn_forward(p_params, x_p, a_hat_p, num_nodes, num_classes, fused, tile)
    out = jax.block_until_ready(out)
    assert out.shape == (num_nodes, num_classes)

    # Also exercise the tiled fallback path (used for graphs too big for VMEM)
    out_tiled = gcn_forward(p_params, x_p, a_hat_p, num_nodes, num_classes,
                            False, tile)
    out_tiled = jax.block_until_ready(out_tiled)
    assert out_tiled.shape == (num_nodes, num_classes)

    ref = reference_forward(x, params, edge_index, num_nodes)
    assert jnp.allclose(out, ref, atol=5e-3, rtol=1e-2), float(
        jnp.max(jnp.abs(out - ref)))
    assert jnp.allclose(out_tiled, ref, atol=5e-3, rtol=1e-2), float(
        jnp.max(jnp.abs(out_tiled - ref)))

    print("KERNEL_OK")
</pallas_src>

<mosaic_0001>
module attributes {stable_mosaic.version = 11 : i64} {
  func.func @_fused_gcn_kernel(%arg0: i32, %arg1: memref<128x128xbf16, #tpu.memory_space<vmem>>, %arg2: memref<128x128xbf16, #tpu.memory_space<vmem>>, %arg3: memref<128x128xbf16, #tpu.memory_space<vmem>>, %arg4: memref<1x128xf32, #tpu.memory_space<vmem>>, %arg5: memref<128x128xbf16, #tpu.memory_space<vmem>>, %arg6: memref<1x128xf32, #tpu.memory_space<vmem>>, %arg7: memref<128x128xf32, #tpu.memory_space<vmem>>) attributes {dimension_semantics = [#tpu.dimension_semantics<arbitrary>], iteration_bounds = array<i64: 1>, scalar_prefetch = 0 : i64, scratch_operands = 0 : i64, tpu.core_type = #tpu.core_type<tc>, window_params = [{pipeline_mode = #tpu.pipeline_mode<synchronous>, transform_indices = @transform_0, window_bounds = array<i64: 128, 128>}, {pipeline_mode = #tpu.pipeline_mode<synchronous>, transform_indices = @transform_1, window_bounds = array<i64: 128, 128>}, {pipeline_mode = #tpu.pipeline_mode<synchronous>, transform_indices = @transform_2, window_bounds = array<i64: 128, 128>}, {pipeline_mode = #tpu.pipeline_mode<synchronous>, transform_indices = @transform_3, window_bounds = array<i64: 1, 128>}, {pipeline_mode = #tpu.pipeline_mode<synchronous>, transform_indices = @transform_4, window_bounds = array<i64: 128, 128>}, {pipeline_mode = #tpu.pipeline_mode<synchronous>, transform_indices = @transform_5, window_bounds = array<i64: 1, 128>}, {pipeline_mode = #tpu.pipeline_mode<synchronous>, transform_indices = @transform_6, window_bounds = array<i64: 128, 128>}]} {
    %c0 = arith.constant 0 : index
    %c0_0 = arith.constant 0 : index
    %0 = vector.load %arg1[%c0, %c0_0] : memref<128x128xbf16, #tpu.memory_space<vmem>>, vector<128x128xbf16>
    %c0_1 = arith.constant 0 : index
    %c0_2 = arith.constant 0 : index
    %1 = vector.load %arg2[%c0_1, %c0_2] : memref<128x128xbf16, #tpu.memory_space<vmem>>, vector<128x128xbf16>
    %c0_3 = arith.constant 0 : index
    %c0_4 = arith.constant 0 : index
    %2 = vector.load %arg3[%c0_3, %c0_4] : memref<128x128xbf16, #tpu.memory_space<vmem>>, vector<128x128xbf16>
    %cst = arith.constant dense<0.000000e+00> : vector<128x128xf32>
    %3 = tpu.matmul %1, %2, %cst {dimension_numbers = #tpu.dot_dimension_numbers<[1], [0], [0], [1], [0, 0, 1, 1], [], []>} : vector<128x128xbf16>, vector<128x128xbf16>, vector<128x128xf32> -> vector<128x128xf32>
    %4 = arith.truncf %3 : vector<128x128xf32> to vector<128x128xbf16>
    %cst_5 = arith.constant dense<0.000000e+00> : vector<128x128xf32>
    %5 = tpu.matmul %0, %4, %cst_5 {dimension_numbers = #tpu.dot_dimension_numbers<[1], [0], [0], [1], [0, 0, 1, 1], [], []>} : vector<128x128xbf16>, vector<128x128xbf16>, vector<128x128xf32> -> vector<128x128xf32>
    %c0_6 = arith.constant 0 : index
    %c0_7 = arith.constant 0 : index
    %6 = vector.load %arg4[%c0_6, %c0_7] : memref<1x128xf32, #tpu.memory_space<vmem>>, vector<1x128xf32>
    %7 = vector.broadcast %6 : vector<1x128xf32> to vector<128x128xf32>
    %8 = arith.addf %5, %7 : vector<128x128xf32>
    %cst_8 = arith.constant 0.000000e+00 : f32
    %9 = vector.broadcast %cst_8 : f32 to vector<128x128xf32>
    %10 = arith.maximumf %8, %9 : vector<128x128xf32>
    %11 = arith.truncf %10 : vector<128x128xf32> to vector<128x128xbf16>
    %c0_9 = arith.constant 0 : index
    %c0_10 = arith.constant 0 : index
    %12 = vector.load %arg5[%c0_9, %c0_10] : memref<128x128xbf16, #tpu.memory_space<vmem>>, vector<128x128xbf16>
    %cst_11 = arith.constant dense<0.000000e+00> : vector<128x128xf32>
    %13 = tpu.matmul %11, %12, %cst_11 {dimension_numbers = #tpu.dot_dimension_numbers<[1], [0], [0], [1], [0, 0, 1, 1], [], []>} : vector<128x128xbf16>, vector<128x128xbf16>, vector<128x128xf32> -> vector<128x128xf32>
    %14 = arith.truncf %13 : vector<128x128xf32> to vector<128x128xbf16>
    %cst_12 = arith.constant dense<0.000000e+00> : vector<128x128xf32>
    %15 = tpu.matmul %0, %14, %cst_12 {dimension_numbers = #tpu.dot_dimension_numbers<[1], [0], [0], [1], [0, 0, 1, 1], [], []>} : vector<128x128xbf16>, vector<128x128xbf16>, vector<128x128xf32> -> vector<128x128xf32>
    %c0_13 = arith.constant 0 : index
    %c0_14 = arith.constant 0 : index
    %16 = vector.load %arg6[%c0_13, %c0_14] : memref<1x128xf32, #tpu.memory_space<vmem>>, vector<1x128xf32>
    %17 = vector.broadcast %16 : vector<1x128xf32> to vector<128x128xf32>
    %18 = arith.addf %15, %17 : vector<128x128xf32>
    %c0_15 = arith.constant 0 : index
    %c0_16 = arith.constant 0 : index
    %19 = vector.load %arg7[%c0_15, %c0_16] : memref<128x128xf32, #tpu.memory_space<vmem>>, vector<128x128xf32>
    tpu.vector_store %arg7[%c0_15, %c0_16], %18 {strides = array<i32>} : memref<128x128xf32, #tpu.memory_space<vmem>>, vector<128x128xf32>,
    return
  }
  func.func @transform_0(%arg0: i32) -> (i32, i32) {
    %c0_i32 = arith.constant 0 : i32
    %c0_i32_0 = arith.constant 0 : i32
    %c0_i32_1 = arith.constant 0 : i32
    return %c0_i32, %c0_i32_0 : i32, i32
  }
  func.func @transform_1(%arg0: i32) -> (i32, i32) {
    %c0_i32 = arith.constant 0 : i32
    %c0_i32_0 = arith.constant 0 : i32
    %c0_i32_1 = arith.constant 0 : i32
    return %c0_i32, %c0_i32_0 : i32, i32
  }
  func.func @transform_2(%arg0: i32) -> (i32, i32) {
    %c0_i32 = arith.constant 0 : i32
    %c0_i32_0 = arith.constant 0 : i32
    %c0_i32_1 = arith.constant 0 : i32
    return %c0_i32, %c0_i32_0 : i32, i32
  }
  func.func @transform_3(%arg0: i32) -> (i32, i32) {
    %c0_i32 = arith.constant 0 : i32
    %c0_i32_0 = arith.constant 0 : i32
    %c0_i32_1 = arith.constant 0 : i32
    return %c0_i32, %c0_i32_0 : i32, i32
  }
  func.func @transform_4(%arg0: i32) -> (i32, i32) {
    %c0_i32 = arith.constant 0 : i32
    %c0_i32_0 = arith.constant 0 : i32
    %c0_i32_1 = arith.constant 0 : i32
    return %c0_i32, %c0_i32_0 : i32, i32
  }
  func.func @transform_5(%arg0: i32) -> (i32, i32) {
    %c0_i32 = arith.constant 0 : i32
    %c0_i32_0 = arith.constant 0 : i32
    %c0_i32_1 = arith.constant 0 : i32
    return %c0_i32, %c0_i32_0 : i32, i32
  }
  func.func @transform_6(%arg0: i32) -> (i32, i32) {
    %c0_i32 = arith.constant 0 : i32
    %c0_i32_0 = arith.constant 0 : i32
    %c0_i32_1 = arith.constant 0 : i32
    return %c0_i32, %c0_i32_0 : i32, i32
  }
}

</mosaic_0001>

<bundles_post_ra>
// kernel: gcn_forward.1
= control target key start
LH: loop header
LB: loop body
LE: loop exit
PB: predicated region body
PF: predicated region fallthrough
CT: control target
= control target key end

     0   :  { %11 = vsyncpa [#allocation3], 0  ;;  %s1334_s0 = inlined_call_operand.hbm [shape: bf16[128,128], index: 0, kind: input, shape index: {}]   ;;  %s1335_s1 = inlined_call_operand.hbm [shape: bf16[128,128], index: 1, kind: input, shape index: {}]   ;;  %s1336_s2 = inlined_call_operand.hbm [shape: bf16[128,128], index: 2, kind: input, shape index: {}]   ;;  %s1337_s3 = inlined_call_operand.hbm [shape: f32[1,128], index: 3, kind: input, shape index: {}]   ;;  %s1338_s4 = inlined_call_operand.hbm [shape: bf16[128,128], index: 4, kind: input, shape index: {}]   ;;  %s1339_s5 = inlined_call_operand.vmem [shape: f32[1,128], index: 5, kind: input, shape index: {}]   ;;  %s1340_s6 = inlined_call_operand.vmem [shape: f32[128,128], index: 6, kind: output, shape index: {}]  }
   0x1   :  { %12 = vsyncpa [#allocation5], 0 }
   0x2   :  { %13 = vsyncpa [#allocation8], 0  ;;  %s1182_s21 = smov [#allocation4]   ;;  %s1183_s23 = smov [#allocation7]  }
   0x3   :  { %s31_s22 = sshll.u32 %s1182_s21, 4  ;;  %s56_s24 = sshll.u32 %s1183_s23, 4  ;;  %s32_s22 = int_to_ptr.vmem [resolvable:$true] %s31_s22  ;;  %s57_s24 = int_to_ptr.vmem [resolvable:$true] %s56_s24 }
   0x4   :  { %s1084_s25 = scalar_lea.vmem %s32_s22, 1024  ;;  %p1089_p1 = scmp.lt.s32.totalorder %s32_s22, %s32_s22 }
   0x5   :  { %p1085_p0 = scmp.ne.s32.totalorder %s32_s22, %s1084_s25  ;;  %p1090_p2 = scmp.lt.s32.totalorder %s1084_s25, %s1084_s25 }
   0x7   :  { %p1091_p3 = por %p1090_p2, %p1089_p1 }
   0x9   :  { %p1092_p4 = pnand %p1091_p3, %p1085_p0 }
   0xb   :  { %1095 = shalt.err (!%p1092_p4)
}
   0xc   :  { %s1184_s26 = smov 64   ;;  %s1185_s27 = smov 4  }
   0xd   :  { %37 = dma.hbm_to_vmem [thread:$0]  %s1335_s1, 1024, %s32_s22, [#allocation5], %s1184_s26, %s1184_s26, %s1185_s27  }
   0xe   :  { %s1104_s30 = scalar_lea.vmem %s57_s24, 16  ;;  %s1108_s7 = scalar_lea.vmem %s57_s24, 32 }
   0xf   :  { %p1105_p5 = scmp.ne.s32.totalorder %s57_s24, %s1104_s30  ;;  %p1109_p6 = scmp.lt.s32.totalorder %s57_s24, %s57_s24 }
  0x10   :  { %p1110_p7 = scmp.lt.s32.totalorder %s1108_s7, %s1104_s30 }
  0x12   :  { %p1111_p8 = por %p1110_p7, %p1109_p6 }
  0x14   :  { %p1112_p9 = pnand %p1111_p8, %p1105_p5 }
  0x16   :  { %1115 = shalt.err (!%p1112_p9)
}
  0x17   :  { %59 = dma.hbm_to_vmem [thread:$0]  %s1337_s3, 16, %s57_s24, [#allocation8]  }
  0x18   :  { %s1186_s10 = smov [#allocation2]   ;;  %s1187_s12 = smov [#allocation6]  }
  0x19   :  { %s19_s11 = sshll.u32 %s1186_s10, 4  ;;  %s43_s13 = sshll.u32 %s1187_s12, 4  ;;  %s20_s11 = int_to_ptr.vmem [resolvable:$true] %s19_s11  ;;  %s44_s13 = int_to_ptr.vmem [resolvable:$true] %s43_s13 }
  0x1a   :  { %s1124_s14 = scalar_lea.vmem %s20_s11, 1024  ;;  %p1129_p11 = scmp.lt.s32.totalorder %s20_s11, %s20_s11 }
  0x1b   :  { %p1125_p10 = scmp.ne.s32.totalorder %s20_s11, %s1124_s14  ;;  %p1130_p12 = scmp.lt.s32.totalorder %s1124_s14, %s1124_s14 }
  0x1d   :  { %p1131_p13 = por %p1130_p12, %p1129_p11 }
  0x1f   :  { %p1132_p0 = pnand %p1131_p13, %p1125_p10 }
  0x21   :  { %1135 = shalt.err (!%p1132_p0)
}
  0x22   :  { %25 = dma.hbm_to_vmem [thread:$0]  %s1334_s0, 1024, %s20_s11, [#allocation3], %s1184_s26, %s1184_s26, %s1185_s27  }
  0x23   :  { %s1144_s3 = scalar_lea.vmem %s44_s13, 1024  ;;  %p1149_p2 = scmp.lt.s32.totalorder %s44_s13, %s44_s13 }
  0x24   :  { %p1145_p1 = scmp.ne.s32.totalorder %s44_s13, %s1144_s3  ;;  %p1150_p3 = scmp.lt.s32.totalorder %s1144_s3, %s1144_s3 }
  0x26   :  { %p1151_p4 = por %p1150_p3, %p1149_p2 }
  0x28   :  { %p1152_p5 = pnand %p1151_p4, %p1145_p1 }
  0x2a   :  { %1155 = shalt.err (!%p1152_p5)
}
  0x2b   :  { %49 = dma.hbm_to_vmem [thread:$0]  %s1336_s2, 1024, %s44_s13, [#allocation5], %s1184_s26, %s1184_s26, %s1185_s27  }
  0x2c   :  { %s1188_s18 = smov [#allocation9]  }
  0x2d   :  { %s65_s19 = sshll.u32 %s1188_s18, 4  ;;  %s66_s19 = int_to_ptr.vmem [resolvable:$true] %s65_s19 }
  0x2e   :  { %s1164_s20 = scalar_lea.vmem %s66_s19, 1024  ;;  %p1169_p7 = scmp.lt.s32.totalorder %s66_s19, %s66_s19 }
  0x2f   :  { %p1165_p6 = scmp.ne.s32.totalorder %s66_s19, %s1164_s20  ;;  %p1170_p8 = scmp.lt.s32.totalorder %s1164_s20, %s1164_s20 }
  0x31   :  { %p1171_p9 = por %p1170_p8, %p1169_p7 }
  0x33   :  { %p1172_p10 = pnand %p1171_p9, %p1165_p6 }
  0x35   :  { %1175 = shalt.err (!%p1172_p10)
}
  0x36   :  { %71 = dma.hbm_to_vmem [thread:$0]  %s1338_s4, 1024, %s66_s19, [#allocation8], %s1184_s26, %s1184_s26, %s1185_s27  }
  0x37   :  { %1176 = dma.done.wait [#allocation3], 1024  }
  0x38   :  { %1177 = vsyncadd [#allocation3], 4294966272 }
  0x39   :  { %1178 = dma.done.wait [#allocation5], 2048  }
  0x3a   :  { %1179 = vsyncadd [#allocation5], 4294965248 }
  0x3b   :  { %1180 = dma.done.wait [#allocation8], 1040  }
  0x3c   :  { %1181 = vsyncadd [#allocation8], 4294966256  ;;  %v1044_v0 = vld [vmem:[#allocation6 + $0x38] sm:$0xff]   ;;  %v1045_v1 = vld [vmem:[#allocation6 + $0x30] sm:$0xff]  }
  0x3d   :  { %909 = vmatprep.subr.bf16.mxu0 %v1044_v0  ;;  %v1046_v2 = vld [vmem:[#allocation6 + $0x28] sm:$0xff]   ;;  %v1047_v3 = vld [vmem:[#allocation6 + $0x20] sm:$0xff]   ;;  %v1048_v5 = vld [vmem:[#allocation6 + $0x18] sm:$0xff]  }
  0x3e   :  { %910 = vmatpush3.bf16.msra.mxu0 %v1044_v0  ;;  %v1052_v4 = vld [vmem:[#allocation4] sm:$0xff]   ;;  %v1049_v6 = vld [vmem:[#allocation6 + $0x10] sm:$0xff]   ;;  %v1050_v7 = vld [vmem:[#allocation6 + $0x8] sm:$0xff]  }
  0x3f   :  { %911 = vmatprep.subr.bf16.mxu0 %v1045_v1  ;;  %925 = vmatprep.mubr.bf16.mxu0 %v1052_v4  ;;  %v1051_v8 = vld [vmem:[#allocation6] sm:$0xff]   ;;  %v1053_v9 = vld [vmem:[#allocation4 + $0x8] sm:$0xff]   ;;  %v1054_v10 = vld [vmem:[#allocation4 + $0x10] sm:$0xff]  }
  0x40   :  { %v1055_v11 = vld [vmem:[#allocation4 + $0x18] sm:$0xff]   ;;  %v1056_v12 = vld [vmem:[#allocation4 + $0x20] sm:$0xff]   ;;  %v1057_v13 = vld [vmem:[#allocation4 + $0x28] sm:$0xff]  }
  0x41   :  { %v1058_v14 = vld [vmem:[#allocation4 + $0x30] sm:$0xff]   ;;  %v1059_v15 = vld [vmem:[#allocation4 + $0x38] sm:$0xff]   ;;  %v1251_v16 = vld [vmem:[#allocation2] sm:$0xff]  }
  0x42   :  { %912 = vmatpush3.bf16.msra.mxu0 %v1045_v1  ;;  %957 = vmatprep.mubr.bf16.mxu1 %v1251_v16  ;;  %v1068_v17 = vld [vmem:[#allocation9 + $0x38] sm:$0xff]   ;;  %v1069_v18 = vld [vmem:[#allocation9 + $0x30] sm:$0xff]   ;;  %v1070_v19 = vld [vmem:[#allocation9 + $0x28] sm:$0xff]  }
  0x43   :  { %913 = vmatprep.subr.bf16.mxu0 %v1046_v2  ;;  %v1071_v20 = vld [vmem:[#allocation9 + $0x20] sm:$0xff]   ;;  %v1072_v21 = vld [vmem:[#allocation9 + $0x18] sm:$0xff]   ;;  %v1256_v47 = vld [vmem:[#allocation2 + $0x10] sm:$0xff]  }
  0x44   :  { %v1254_v46 = vld [vmem:[#allocation2 + $0x8] sm:$0xff]   ;;  %v1260_v48 = vld [vmem:[#allocation2 + $0x18] sm:$0xff]   ;;  %v1262_v49 = vld [vmem:[#allocation2 + $0x20] sm:$0xff]  }
  0x45   :  { %v1266_v50 = vld [vmem:[#allocation2 + $0x28] sm:$0xff]   ;;  %v1268_v51 = vld [vmem:[#allocation2 + $0x30] sm:$0xff]   ;;  %v1272_v52 = vld [vmem:[#allocation2 + $0x38] sm:$0xff]  }
  0x46   :  { %914 = vmatpush3.bf16.msra.mxu0 %v1046_v2  ;;  %v1073_v53 = vld [vmem:[#allocation9 + $0x10] sm:$0xff]   ;;  %v1074_v54 = vld [vmem:[#allocation9 + $0x8] sm:$0xff]   ;;  %v1075_v55 = vld [vmem:[#allocation9] sm:$0xff]  }
  0x47   :  { %915 = vmatprep.subr.bf16.mxu0 %v1047_v3  ;;  %v827_v58 = vld [vmem:[#allocation7] ss:$0 sm:$0xff] }
  0x4a   :  { %916 = vmatpush3.bf16.msra.mxu0 %v1047_v3 }
  0x4b   :  { %917 = vmatprep.subr.bf16.mxu0 %v1048_v5 }
  0x4e   :  { %918 = vmatpush3.bf16.msra.mxu0 %v1048_v5 }
  0x4f   :  { %919 = vmatprep.subr.bf16.mxu0 %v1049_v6 }
  0x52   :  { %920 = vmatpush3.bf16.msra.mxu0 %v1049_v6 }
  0x53   :  { %921 = vmatprep.subr.bf16.mxu0 %v1050_v7 }
  0x56   :  { %922 = vmatpush3.bf16.msra.mxu0 %v1050_v7 }
  0x57   :  { %923 = vmatprep.subr.bf16.mxu0 %v1051_v8 }
  0x5a   :  { %924 = vmatpush3.bf16.msra.mxu0 %v1051_v8 }
  0x5b   :  { %973 = vmatprep.subr.bf16.mxu0 %v1068_v17 }
  0x5d   :  { %926 = vmatmul.mubr.bf16.vlgmr.msra.gmra.mxu0 %v1053_v9 }
  0x5e   :  { %929 = vmatprep.mubr.bf16.mxu0 %v1054_v10  ;;  %974 = vmatpush3.bf16.msra.mxu0 %v1068_v17 }
  0x5f   :  { %975 = vmatprep.subr.bf16.mxu0 %v1069_v18 }
  0x62   :  { %976 = vmatpush3.bf16.msra.mxu0 %v1069_v18 }
  0x63   :  { %977 = vmatprep.subr.bf16.mxu0 %v1070_v19 }
  0x65   :  { %930 = vmatmul.mubr.bf16.gmra.mxu0 %v1055_v11 }
  0x66   :  { %933 = vmatprep.mubr.bf16.mxu0 %v1056_v12  ;;  %978 = vmatpush3.bf16.msra.mxu0 %v1070_v19 }
  0x67   :  { %979 = vmatprep.subr.bf16.mxu0 %v1071_v20 }
  0x6a   :  { %980 = vmatpush3.bf16.msra.mxu0 %v1071_v20 }
  0x6b   :  { %981 = vmatprep.subr.bf16.mxu0 %v1072_v21 }
  0x6d   :  { %934 = vmatmul.mubr.bf16.gmra.mxu0 %v1057_v13 }
  0x6e   :  { %937 = vmatprep.mubr.bf16.mxu0 %v1058_v14  ;;  %982 = vmatpush3.bf16.msra.mxu0 %v1072_v21 }
  0x6f   :  { %983 = vmatprep.subr.bf16.mxu0 %v1073_v53 }
  0x72   :  { %984 = vmatpush3.bf16.msra.mxu0 %v1073_v53 }
  0x73   :  { %985 = vmatprep.subr.bf16.mxu0 %v1074_v54 }
  0x75   :  { %938 = vmatmul.mubr.bf16.gmra.mxu0 %v1059_v15 }
  0x76   :  { %986 = vmatpush3.bf16.msra.mxu0 %v1074_v54 }
  0x77   :  { %987 = vmatprep.subr.bf16.mxu0 %v1075_v55 }
  0x7a   :  { %988 = vmatpush3.bf16.msra.mxu0 %v1075_v55 }
 0x11d   :  { %v927_v22 = vpop.f32.mrf.mxu0 }
 0x11f   :  { %v268_v23 = vpop.f32.mrf.mxu0 }
 0x121   :  { %v928_v24 = vpop.f32.mrf.mxu0 }
 0x122   :  { %v332_v44 = vpack.c.bf16 %v928_v24, %v927_v22 }
 0x123   :  { %v271_v25 = vpop.f32.mrf.mxu0 }
 0x124   :  { %v331_v45 = vpack.c.bf16 %v271_v25, %v268_v23 }
 0x125   :  { %v931_v26 = vpop.f32.mrf.mxu0 }
 0x127   :  { %v284_v27 = vpop.f32.mrf.mxu0 }
 0x129   :  { %v932_v28 = vpop.f32.mrf.mxu0 }
 0x12a   :  { %v334_v42 = vpack.c.bf16 %v932_v28, %v931_v26 }
 0x12b   :  { %v287_v29 = vpop.f32.mrf.mxu0 }
 0x12c   :  { %v333_v43 = vpack.c.bf16 %v287_v29, %v284_v27 }
 0x12d   :  { %v935_v30 = vpop.f32.mrf.mxu0 }
 0x12f   :  { %v300_v31 = vpop.f32.mrf.mxu0 }
 0x131   :  { %v936_v32 = vpop.f32.mrf.mxu0 }
 0x132   :  { %v336_v40 = vpack.c.bf16 %v936_v32, %v935_v30 }
 0x133   :  { %v303_v33 = vpop.f32.mrf.mxu0 }
 0x134   :  { %v335_v41 = vpack.c.bf16 %v303_v33, %v300_v31 }
 0x135   :  { %v939_v34 = vpop.f32.mrf.mxu0 }
 0x137   :  { %v316_v35 = vpop.f32.mrf.mxu0 }
 0x139   :  { %v940_v36 = vpop.f32.mrf.mxu0 }
 0x13a   :  { %v338_v37 = vpack.c.bf16 %v940_v36, %v939_v34 }
 0x13b   :  { %v319_v38 = vpop.f32.mrf.mxu0 }
 0x13c   :  { %v337_v39 = vpack.c.bf16 %v319_v38, %v316_v35  ;;  %941 = vmatprep.subr.bf16.mxu1 %v338_v37 }
 0x13d   :  { %942 = vmatpush3.bf16.msra.mxu1 %v338_v37 }
 0x13e   :  { %943 = vmatprep.subr.bf16.mxu1 %v337_v39 }
 0x141   :  { %944 = vmatpush3.bf16.msra.mxu1 %v337_v39 }
 0x142   :  { %945 = vmatprep.subr.bf16.mxu1 %v336_v40 }
 0x145   :  { %946 = vmatpush3.bf16.msra.mxu1 %v336_v40 }
 0x146   :  { %947 = vmatprep.subr.bf16.mxu1 %v335_v41 }
 0x149   :  { %948 = vmatpush3.bf16.msra.mxu1 %v335_v41 }
 0x14a   :  { %949 = vmatprep.subr.bf16.mxu1 %v334_v42 }
 0x14d   :  { %950 = vmatpush3.bf16.msra.mxu1 %v334_v42 }
 0x14e   :  { %951 = vmatprep.subr.bf16.mxu1 %v333_v43 }
 0x151   :  { %952 = vmatpush3.bf16.msra.mxu1 %v333_v43 }
 0x152   :  { %953 = vmatprep.subr.bf16.mxu1 %v332_v44 }
 0x155   :  { %954 = vmatpush3.bf16.msra.mxu1 %v332_v44 }
 0x156   :  { %955 = vmatprep.subr.bf16.mxu1 %v331_v45 }
 0x159   :  { %956 = vmatpush3.bf16.msra.mxu1 %v331_v45 }
 0x15c   :  { %958 = vmatmul.mubr.bf16.vlgmr.msra.gmra.mxu1 %v1254_v46 }
 0x15d   :  { %961 = vmatprep.mubr.bf16.mxu1 %v1256_v47 }
 0x164   :  { %962 = vmatmul.mubr.bf16.gmra.mxu1 %v1260_v48 }
 0x165   :  { %965 = vmatprep.mubr.bf16.mxu1 %v1262_v49 }
 0x16c   :  { %966 = vmatmul.mubr.bf16.gmra.mxu1 %v1266_v50 }
 0x16d   :  { %969 = vmatprep.mubr.bf16.mxu1 %v1268_v51 }
 0x174   :  { %970 = vmatmul.mubr.bf16.gmra.mxu1 %v1272_v52 }
 0x175   :  { %1021 = vmatprep.mubr.bf16.mxu1 %v1251_v16 }
 0x21c   :  { %v959_v56 = vpop.f32.mrf.mxu1 }
 0x21d   :  { %v437_v62 = vadd.f32 %v959_v56, %v827_v58 }
 0x21e   :  { %v428_v57 = vpop.f32.mrf.mxu1 }
 0x21f   :  { %v429_v60 = vadd.f32 %v827_v58, %v428_v57  ;;  %v493_v5 = vmax.f32 %v437_v62, 0.0 }
 0x220   :  { %v960_v59 = vpop.f32.mrf.mxu1 }
 0x221   :  { %v440_v61 = vadd.f32 %v960_v59, %v827_v58  ;;  %v491_v3 = vmax.f32 %v429_v60, 0.0 }
 0x222   :  { %v431_v63 = vpop.f32.mrf.mxu1 }
 0x223   :  { %v432_v0 = vadd.f32 %v827_v58, %v431_v63  ;;  %v494_v1 = vmax.f32 %v440_v61, 0.0 }
 0x224   :  { %v963_v2 = vpop.f32.mrf.mxu1 }
 0x225   :  { %v492_v4 = vmax.f32 %v432_v0, 0.0  ;;  %v508_v8 = vpack.c.bf16 %v494_v1, %v493_v5  ;;  %v453_v12 = vadd.f32 %v963_v2, %v827_v58 }
 0x226   :  { %v444_v6 = vpop.f32.mrf.mxu1 }
 0x227   :  { %v507_v7 = vpack.c.bf16 %v492_v4, %v491_v3  ;;  %v445_v10 = vadd.f32 %v827_v58, %v444_v6  ;;  %v497_v19 = vmax.f32 %v453_v12, 0.0 }
 0x228   :  { %v964_v9 = vpop.f32.mrf.mxu1 }
 0x229   :  { %v456_v11 = vadd.f32 %v964_v9, %v827_v58  ;;  %989 = vmatprep.mubr.bf16.mxu0 %v507_v7  ;;  %v495_v17 = vmax.f32 %v445_v10, 0.0 }
 0x22a   :  { %v447_v13 = vpop.f32.mrf.mxu1  ;;  %990 = vmatmul.mubr.bf16.vlgmr.msra.gmra.mxu0 %v508_v8 }
 0x22b   :  { %v448_v14 = vadd.f32 %v827_v58, %v447_v13  ;;  %v498_v15 = vmax.f32 %v456_v11, 0.0 }
 0x22c   :  { %v967_v16 = vpop.f32.mrf.mxu1 }
 0x22d   :  { %v496_v18 = vmax.f32 %v448_v14, 0.0  ;;  %v510_v22 = vpack.c.bf16 %v498_v15, %v497_v19  ;;  %v469_v26 = vadd.f32 %v967_v16, %v827_v58  ;;  %v844_v16 = vld [vmem:[%s1339_s5] ss:$0 sm:$0xff] }
 0x22e   :  { %v460_v20 = vpop.f32.mrf.mxu1 }
 0x22f   :  { %v509_v21 = vpack.c.bf16 %v496_v18, %v495_v17  ;;  %v461_v24 = vadd.f32 %v827_v58, %v460_v20  ;;  %v501_v33 = vmax.f32 %v469_v26, 0.0 }
 0x230   :  { %v968_v23 = vpop.f32.mrf.mxu1 }
 0x231   :  { %v472_v25 = vadd.f32 %v968_v23, %v827_v58  ;;  %993 = vmatprep.mubr.bf16.mxu0 %v509_v21  ;;  %v499_v31 = vmax.f32 %v461_v24, 0.0 }
 0x232   :  { %v463_v27 = vpop.f32.mrf.mxu1  ;;  %994 = vmatmul.mubr.bf16.gmra.mxu0 %v510_v22 }
 0x233   :  { %v464_v28 = vadd.f32 %v827_v58, %v463_v27  ;;  %v502_v29 = vmax.f32 %v472_v25, 0.0 }
 0x234   :  { %v971_v30 = vpop.f32.mrf.mxu1 }
 0x235   :  { %v500_v32 = vmax.f32 %v464_v28, 0.0  ;;  %v512_v36 = vpack.c.bf16 %v502_v29, %v501_v33  ;;  %v485_v40 = vadd.f32 %v971_v30, %v827_v58 }
 0x236   :  { %v476_v34 = vpop.f32.mrf.mxu1 }
 0x237   :  { %v511_v35 = vpack.c.bf16 %v500_v32, %v499_v31  ;;  %v477_v38 = vadd.f32 %v827_v58, %v476_v34  ;;  %v505_v53 = vmax.f32 %v485_v40, 0.0 }
 0x238   :  { %v972_v37 = vpop.f32.mrf.mxu1 }
 0x239   :  { %v488_v39 = vadd.f32 %v972_v37, %v827_v58  ;;  %997 = vmatprep.mubr.bf16.mxu0 %v511_v35  ;;  %v503_v44 = vmax.f32 %v477_v38, 0.0 }
 0x23a   :  { %v479_v41 = vpop.f32.mrf.mxu1  ;;  %998 = vmatmul.mubr.bf16.gmra.mxu0 %v512_v36 }
 0x23b   :  { %v480_v42 = vadd.f32 %v827_v58, %v479_v41  ;;  %v506_v43 = vmax.f32 %v488_v39, 0.0 }
 0x23d   :  { %v504_v45 = vmax.f32 %v480_v42, 0.0  ;;  %v514_v55 = vpack.c.bf16 %v506_v43, %v505_v53 }
 0x23f   :  { %v513_v54 = vpack.c.bf16 %v504_v45, %v503_v44 }
 0x241   :  { %1001 = vmatprep.mubr.bf16.mxu0 %v513_v54 }
 0x242   :  { %1002 = vmatmul.mubr.bf16.gmra.mxu0 %v514_v55 }
 0x2ea   :  { %v991_v56 = vpop.f32.mrf.mxu0 }
 0x2ec   :  { %v613_v57 = vpop.f32.mrf.mxu0 }
 0x2ee   :  { %v992_v59 = vpop.f32.mrf.mxu0 }
 0x2ef   :  { %v677_v14 = vpack.c.bf16 %v992_v59, %v991_v56 }
 0x2f0   :  { %v616_v60 = vpop.f32.mrf.mxu0 }
 0x2f1   :  { %v676_v15 = vpack.c.bf16 %v616_v60, %v613_v57 }
 0x2f2   :  { %v995_v61 = vpop.f32.mrf.mxu0 }
 0x2f4   :  { %v629_v62 = vpop.f32.mrf.mxu0 }
 0x2f6   :  { %v996_v63 = vpop.f32.mrf.mxu0 }
 0x2f7   :  { %v679_v12 = vpack.c.bf16 %v996_v63, %v995_v61 }
 0x2f8   :  { %v632_v0 = vpop.f32.mrf.mxu0 }
 0x2f9   :  { %v678_v13 = vpack.c.bf16 %v632_v0, %v629_v62 }
 0x2fa   :  { %v999_v1 = vpop.f32.mrf.mxu0 }
 0x2fc   :  { %v645_v2 = vpop.f32.mrf.mxu0 }
 0x2fe   :  { %v1000_v3 = vpop.f32.mrf.mxu0 }
 0x2ff   :  { %v681_v10 = vpack.c.bf16 %v1000_v3, %v999_v1 }
 0x300   :  { %v648_v58 = vpop.f32.mrf.mxu0 }
 0x301   :  { %v680_v11 = vpack.c.bf16 %v648_v58, %v645_v2 }
 0x302   :  { %v1003_v4 = vpop.f32.mrf.mxu0 }
 0x304   :  { %v661_v5 = vpop.f32.mrf.mxu0 }
 0x306   :  { %v1004_v6 = vpop.f32.mrf.mxu0 }
 0x307   :  { %v683_v7 = vpack.c.bf16 %v1004_v6, %v1003_v4 }
 0x308   :  { %v664_v8 = vpop.f32.mrf.mxu0 }
 0x309   :  { %v682_v9 = vpack.c.bf16 %v664_v8, %v661_v5  ;;  %1005 = vmatprep.subr.bf16.mxu1 %v683_v7 }
 0x30a   :  { %1006 = vmatpush3.bf16.msra.mxu1 %v683_v7 }
 0x30b   :  { %1007 = vmatprep.subr.bf16.mxu1 %v682_v9 }
 0x30e   :  { %1008 = vmatpush3.bf16.msra.mxu1 %v682_v9 }
 0x30f   :  { %1009 = vmatprep.subr.bf16.mxu1 %v681_v10 }
 0x312   :  { %1010 = vmatpush3.bf16.msra.mxu1 %v681_v10 }
 0x313   :  { %1011 = vmatprep.subr.bf16.mxu1 %v680_v11 }
 0x316   :  { %1012 = vmatpush3.bf16.msra.mxu1 %v680_v11 }
 0x317   :  { %1013 = vmatprep.subr.bf16.mxu1 %v679_v12 }
 0x31a   :  { %1014 = vmatpush3.bf16.msra.mxu1 %v679_v12 }
 0x31b   :  { %1015 = vmatprep.subr.bf16.mxu1 %v678_v13 }
 0x31e   :  { %1016 = vmatpush3.bf16.msra.mxu1 %v678_v13 }
 0x31f   :  { %1017 = vmatprep.subr.bf16.mxu1 %v677_v14 }
 0x322   :  { %1018 = vmatpush3.bf16.msra.mxu1 %v677_v14 }
 0x323   :  { %1019 = vmatprep.subr.bf16.mxu1 %v676_v15 }
 0x326   :  { %1020 = vmatpush3.bf16.msra.mxu1 %v676_v15 }
 0x329   :  { %1022 = vmatmul.mubr.bf16.vlgmr.msra.gmra.mxu1 %v1254_v46 }
 0x32a   :  { %1025 = vmatprep.mubr.bf16.mxu1 %v1256_v47 }
 0x331   :  { %1026 = vmatmul.mubr.bf16.gmra.mxu1 %v1260_v48 }
 0x332   :  { %1029 = vmatprep.mubr.bf16.mxu1 %v1262_v49 }
 0x339   :  { %1030 = vmatmul.mubr.bf16.gmra.mxu1 %v1266_v50 }
 0x33a   :  { %1033 = vmatprep.mubr.bf16.mxu1 %v1268_v51 }
 0x341   :  { %1034 = vmatmul.mubr.bf16.gmra.mxu1 %v1272_v52 }
 0x3e9   :  { %v1023_v17 = vpop.f32.mrf.mxu1 }
 0x3ea   :  { %v734_v18 = vadd.f32 %v1023_v17, %v844_v16 }
 0x3eb   :  { %v725_v19 = vpop.f32.mrf.mxu1 }
 0x3ec   :  { %790 = vst [vmem:[%s1340_s6 + $0x10] sm:$0xff] %v734_v18  ;;  %v726_v46 = vadd.f32 %v844_v16, %v725_v19 }
 0x3ed   :  { %v1024_v47 = vpop.f32.mrf.mxu1 }
 0x3ee   :  { %788 = vst [vmem:[%s1340_s6] sm:$0xff] %v726_v46  ;;  %v737_v48 = vadd.f32 %v1024_v47, %v844_v16 }
 0x3ef   :  { %v728_v49 = vpop.f32.mrf.mxu1 }
 0x3f0   :  { %791 = vst [vmem:[%s1340_s6 + $0x18] sm:$0xff] %v737_v48  ;;  %v729_v50 = vadd.f32 %v844_v16, %v728_v49 }
 0x3f1   :  { %v1027_v51 = vpop.f32.mrf.mxu1 }
 0x3f2   :  { %789 = vst [vmem:[%s1340_s6 + $0x8] sm:$0xff] %v729_v50  ;;  %v750_v52 = vadd.f32 %v1027_v51, %v844_v16 }
 0x3f3   :  { %v741_v20 = vpop.f32.mrf.mxu1 }
 0x3f4   :  { %794 = vst [vmem:[%s1340_s6 + $0x30] sm:$0xff] %v750_v52  ;;  %v742_v21 = vadd.f32 %v844_v16, %v741_v20 }
 0x3f5   :  { %v1028_v22 = vpop.f32.mrf.mxu1 }
 0x3f6   :  { %792 = vst [vmem:[%s1340_s6 + $0x20] sm:$0xff] %v742_v21  ;;  %v753_v23 = vadd.f32 %v1028_v22, %v844_v16 }
 0x3f7   :  { %v744_v24 = vpop.f32.mrf.mxu1 }
 0x3f8   :  { %795 = vst [vmem:[%s1340_s6 + $0x38] sm:$0xff] %v753_v23  ;;  %v745_v25 = vadd.f32 %v844_v16, %v744_v24 }
 0x3f9   :  { %v1031_v26 = vpop.f32.mrf.mxu1 }
 0x3fa   :  { %793 = vst [vmem:[%s1340_s6 + $0x28] sm:$0xff] %v745_v25  ;;  %v766_v27 = vadd.f32 %v1031_v26, %v844_v16 }
 0x3fb   :  { %v757_v28 = vpop.f32.mrf.mxu1 }
 0x3fc   :  { %798 = vst [vmem:[%s1340_s6 + $0x50] sm:$0xff] %v766_v27  ;;  %v758_v29 = vadd.f32 %v844_v16, %v757_v28 }
 0x3fd   :  { %v1032_v30 = vpop.f32.mrf.mxu1 }
 0x3fe   :  { %796 = vst [vmem:[%s1340_s6 + $0x40] sm:$0xff] %v758_v29  ;;  %v769_v31 = vadd.f32 %v1032_v30, %v844_v16 }
 0x3ff   :  { %v760_v32 = vpop.f32.mrf.mxu1 }
 0x400   :  { %799 = vst [vmem:[%s1340_s6 + $0x58] sm:$0xff] %v769_v31  ;;  %v761_v33 = vadd.f32 %v844_v16, %v760_v32 }
 0x401   :  { %v1035_v34 = vpop.f32.mrf.mxu1 }
 0x402   :  { %797 = vst [vmem:[%s1340_s6 + $0x48] sm:$0xff] %v761_v33  ;;  %v782_v35 = vadd.f32 %v1035_v34, %v844_v16 }
 0x403   :  { %v773_v36 = vpop.f32.mrf.mxu1 }
 0x404   :  { %802 = vst [vmem:[%s1340_s6 + $0x70] sm:$0xff] %v782_v35  ;;  %v774_v37 = vadd.f32 %v844_v16, %v773_v36 }
 0x405   :  { %v1036_v38 = vpop.f32.mrf.mxu1 }
 0x406   :  { %800 = vst [vmem:[%s1340_s6 + $0x60] sm:$0xff] %v774_v37  ;;  %v785_v39 = vadd.f32 %v1036_v38, %v844_v16 }
 0x407   :  { %v776_v40 = vpop.f32.mrf.mxu1 }
 0x408   :  { %803 = vst [vmem:[%s1340_s6 + $0x78] sm:$0xff] %v785_v39  ;;  %v777_v41 = vadd.f32 %v844_v16, %v776_v40 }
 0x40a   :  { %801 = vst [vmem:[%s1340_s6 + $0x68] sm:$0xff] %v777_v41 }
 0x40b   :  { %808 = vsyncpa [#allocation3], 1 }
 0x40c   :  { %809 = vsyncpa [#allocation5], 1 }
 0x40d   :  { %810 = vsyncpa [#allocation8], 1 }

</bundles_post_ra>
